<compile_context>
chip_gen: v5e
topology: v5e:2x2
jax: 0.10.0
libtpu: 0.0.40
codegen_flags: <defaults>
</compile_context>

<pallas_src>
import jax
import jax.numpy as jnp
from jax.experimental import pallas as pl
from jax.experimental.pallas import tpu as pltpu


def _mlp_kernel(xt_ref, w1_ref, b1_ref, w2_ref, b2_ref, o_ref):
    xt = xt_ref[...]                                   # (D_in, Np)  points on lanes
    w1 = w1_ref[...]                                   # (H, D_in)
    d_in = xt.shape[0]

    # Layer 1 on the VPU: K == D_in == 2 is degenerate for the MXU, so build
    # h = w1 @ x^T as D_in broadcast FMAs (outer-product accumulation).
    h = w1[:, 0:1] * xt[0:1, :]                        # (H, Np)
    for k in range(1, d_in):                           # static unroll, D_in tiny
        h = h + w1[:, k:k + 1] * xt[k:k + 1, :]
    h = jnp.tanh(h + b1_ref[...])                      # bias (H,1) over lanes; EUP tanh

    # Layer 2 on the MXU: (D_out, H) @ (H, Np) -> lane-dense (D_out, Np).
    y = jnp.dot(w2_ref[...], h, preferred_element_type=jnp.float32)
    o_ref[...] = (y + b2_ref[...]).astype(o_ref.dtype)


@jax.jit
def two_layer_net(x, w1, b1, w2, b2):
    """y = tanh(x @ w1.T + b1) @ w2.T + b2  (matches torch TwoLayerNet.forward).

    x: (N, D_in); w1: (H, D_in); b1: (H,); w2: (D_out, H); b2: (D_out,)
    Weights are taken directly in torch nn.Linear layout (no pre-transpose).
    """
    n, _ = x.shape
    h_dim = w1.shape[0]
    d_out = w2.shape[0]

    # Lane-dense layout: pad the point count up to a multiple of 128 lanes.
    # TODO(synk): if the caller can supply x already as (D_in, N_pad) this
    # wrapper-side transpose + pad disappears entirely.
    n_pad = ((n + 127) // 128) * 128
    xt = jnp.pad(x.T, ((0, 0), (0, n_pad - n)))        # (D_in, N_pad)

    yt = pl.pallas_call(
        _mlp_kernel,
        out_shape=jax.ShapeDtypeStruct((d_out, n_pad), x.dtype),
        # Single step: full arrays resident in VMEM, no grid / pipelining.
        in_specs=[pl.BlockSpec(memory_space=pltpu.MemorySpace.VMEM)] * 5,
        out_specs=pl.BlockSpec(memory_space=pltpu.MemorySpace.VMEM),
    )(xt, w1, b1.reshape(h_dim, 1), w2, b2.reshape(d_out, 1))

    # Padded columns only produce tanh(b1)-based garbage; sliced off here.
    return yt[:, :n].T                                 # back to (N, D_out)


def _init_linear_params(key, fan_in, fan_out):
    # deterministic, mimics torch.nn.Linear default init: U(-1/sqrt(fan_in), +)
    k_w, k_b = jax.random.split(key)
    bound = 1.0 / jnp.sqrt(jnp.asarray(fan_in, jnp.float32))
    w = jax.random.uniform(k_w, (fan_out, fan_in), jnp.float32, -bound, bound)
    b = jax.random.uniform(k_b, (fan_out,), jnp.float32, -bound, bound)
    return w, b


if __name__ == "__main__":
    # Shapes implied by the collocation script: D_in = 2 (x, y coords),
    # D_out = 2 (displacements), N = 21*21 = 441 collocation points, H = 32.
    D_in, H, D_out = 2, 32, 2
    N = 21 * 21

    key = jax.random.PRNGKey(0)
    k_x, k_l1, k_l2 = jax.random.split(key, 3)

    x = jax.random.uniform(k_x, (N, D_in), jnp.float32)   # collocation points
    w1, b1 = _init_linear_params(k_l1, D_in, H)            # (H, D_in), (H,)
    w2, b2 = _init_linear_params(k_l2, H, D_out)           # (D_out, H), (D_out,)

    y = two_layer_net(x, w1, b1, w2, b2)
    y = jax.block_until_ready(y)

    # correctness check against plain-JAX reference of the torch forward
    y_ref = jnp.tanh(x @ w1.T + b1) @ w2.T + b2
    assert y.shape == (N, D_out)
    assert jnp.allclose(y, y_ref, atol=1e-5, rtol=1e-5)

    print("KERNEL_OK")
</pallas_src>

<mosaic_0001>
module attributes {stable_mosaic.version = 11 : i64} {
  func.func @_mlp_kernel(%arg0: memref<2x512xf32, #tpu.memory_space<vmem>>, %arg1: memref<32x2xf32, #tpu.memory_space<vmem>>, %arg2: memref<32x1xf32, #tpu.memory_space<vmem>>, %arg3: memref<2x32xf32, #tpu.memory_space<vmem>>, %arg4: memref<2x1xf32, #tpu.memory_space<vmem>>, %arg5: memref<2x512xf32, #tpu.memory_space<vmem>>) attributes {dimension_semantics = [], scalar_prefetch = 0 : i64, scratch_operands = 0 : i64, tpu.core_type = #tpu.core_type<tc>} {
    %c0 = arith.constant 0 : index
    %c0_0 = arith.constant 0 : index
    %0 = vector.load %arg0[%c0, %c0_0] : memref<2x512xf32, #tpu.memory_space<vmem>>, vector<2x512xf32>
    %c0_1 = arith.constant 0 : index
    %c0_2 = arith.constant 0 : index
    %1 = vector.load %arg1[%c0_1, %c0_2] : memref<32x2xf32, #tpu.memory_space<vmem>>, vector<32x2xf32>
    %2 = vector.extract_strided_slice %1 {offsets = [0, 0], sizes = [32, 1], strides = [1, 1]} : vector<32x2xf32> to vector<32x1xf32>
    %3 = vector.extract_strided_slice %0 {offsets = [0, 0], sizes = [1, 512], strides = [1, 1]} : vector<2x512xf32> to vector<1x512xf32>
    %4 = vector.broadcast %2 : vector<32x1xf32> to vector<32x512xf32>
    %5 = vector.broadcast %3 : vector<1x512xf32> to vector<32x512xf32>
    %6 = arith.mulf %4, %5 : vector<32x512xf32>
    %7 = vector.extract_strided_slice %1 {offsets = [0, 1], sizes = [32, 1], strides = [1, 1]} : vector<32x2xf32> to vector<32x1xf32>
    %8 = vector.extract_strided_slice %0 {offsets = [1, 0], sizes = [1, 512], strides = [1, 1]} : vector<2x512xf32> to vector<1x512xf32>
    %9 = vector.broadcast %7 : vector<32x1xf32> to vector<32x512xf32>
    %10 = vector.broadcast %8 : vector<1x512xf32> to vector<32x512xf32>
    %11 = arith.mulf %9, %10 : vector<32x512xf32>
    %12 = arith.addf %6, %11 : vector<32x512xf32>
    %c0_3 = arith.constant 0 : index
    %c0_4 = arith.constant 0 : index
    %13 = vector.load %arg2[%c0_3, %c0_4] : memref<32x1xf32, #tpu.memory_space<vmem>>, vector<32x1xf32>
    %14 = vector.broadcast %13 : vector<32x1xf32> to vector<32x512xf32>
    %15 = arith.addf %12, %14 : vector<32x512xf32>
    %16 = math.tanh %15 : vector<32x512xf32>
    %c0_5 = arith.constant 0 : index
    %c0_6 = arith.constant 0 : index
    %17 = vector.load %arg3[%c0_5, %c0_6] : memref<2x32xf32, #tpu.memory_space<vmem>>, vector<2x32xf32>
    %cst = arith.constant dense<0.000000e+00> : vector<2x512xf32>
    %18 = tpu.matmul %17, %16, %cst {dimension_numbers = #tpu.dot_dimension_numbers<[1], [0], [0], [1], [0, 0, 1, 1], [], []>} : vector<2x32xf32>, vector<32x512xf32>, vector<2x512xf32> -> vector<2x512xf32>
    %c0_7 = arith.constant 0 : index
    %c0_8 = arith.constant 0 : index
    %19 = vector.load %arg4[%c0_7, %c0_8] : memref<2x1xf32, #tpu.memory_space<vmem>>, vector<2x1xf32>
    %20 = vector.broadcast %19 : vector<2x1xf32> to vector<2x512xf32>
    %21 = arith.addf %18, %20 : vector<2x512xf32>
    %c0_9 = arith.constant 0 : index
    %c0_10 = arith.constant 0 : index
    %22 = vector.load %arg5[%c0_9, %c0_10] : memref<2x512xf32, #tpu.memory_space<vmem>>, vector<2x512xf32>
    tpu.vector_store %arg5[%c0_9, %c0_10], %21 {strides = array<i32>} : memref<2x512xf32, #tpu.memory_space<vmem>>, vector<2x512xf32>,
    return
  }
}

</mosaic_0001>

<bundles_post_ra>
// kernel: two_layer_net.1
= control target key start
LH: loop header
LB: loop body
LE: loop exit
PB: predicated region body
PF: predicated region fallthrough
CT: control target
= control target key end

     0   :  { %v347_v0 = vmov 0   ;;  %v348_v4 = vmov 1   ;;  %vm197_vm0 = vcmask 261120   ;;  %vm288_vm1 = vcmask 1041408   ;;  %s433_s1 = inlined_call_operand.vmem [shape: f32[32,2], index: 1, kind: input, shape index: {}]   ;;  %s434_s2 = inlined_call_operand.vmem [shape: f32[32,1], index: 2, kind: input, shape index: {}]   ;;  %s435_s4 = inlined_call_operand.vmem [shape: f32[2,1], index: 4, kind: input, shape index: {}]   ;;  %s436_s0 = inlined_call_operand.vmem [shape: f32[2,512], index: 0, kind: input, shape index: {}]   ;;  %s437_s3 = inlined_call_operand.vmem [shape: f32[2,32], index: 3, kind: input, shape index: {}]   ;;  %s438_s5 = inlined_call_operand.vmem [shape: f32[2,512], index: 5, kind: output, shape index: {}]  }
   0x1   :  { %308 = vset.pattern.permute.xlu1 %v347_v0  ;;  %306 = vset.pattern.permute.xlu0 %v347_v0  ;;  %v24_v1 = vld [vmem:[%s433_s1 + $0x18] sm:$0xff]  ;;  %v23_v2 = vld [vmem:[%s433_s1 + $0x10] sm:$0xff]  ;;  %v22_v3 = vld [vmem:[%s433_s1 + $0x8] sm:$0xff]  ;;  %vm290_vm2 = vcmask 1045508   ;;  %vm292_vm3 = vcmask 1043456  }
   0x2   :  { %42 = vperm.xlu0 %306, %v24_v1   ;;  %37 = vperm.xlu1 %308, %v23_v2   ;;  %v21_v5 = vld [vmem:[%s433_s1] sm:$0xff]  ;;  %v137_v6 = vld [vmem:[%s434_s2 + $0x18] sm:$0xff]  ;;  %v136_v7 = vld [vmem:[%s434_s2 + $0x10] sm:$0xff] }
   0x3   :  { %310 = vset.pattern.permute.xlu2 %v347_v0  ;;  %v134_v8 = vld [vmem:[%s434_s2] sm:$0xff]  ;;  %v135_v9 = vld [vmem:[%s434_s2 + $0x8] sm:$0xff] }
   0x4   :  { %32 = vperm.xlu2 %310, %v22_v3   ;;  %v191_v10 = vld [vmem:[%s435_s4] sm:$0x3] }
   0x5   :  { %v20_v13 = vld [vmem:[%s436_s0] sm:$0xff] }
   0x6   :  { %v90_v14 = vperm.slane %v20_v13, 1  ;;  %v91_v15 = vperm.slane %v20_v13, 3  ;;  %v46_v18 = vperm.slane %v20_v13, 0  ;;  %v47_v19 = vperm.slane %v20_v13, 2 }
   0x7   :  { %v92_v25 = vperm.slane %v20_v13, 5  ;;  %v93_v26 = vperm.slane %v20_v13, 7  ;;  %v48_v27 = vperm.slane %v20_v13, 4  ;;  %v49_v30 = vperm.slane %v20_v13, 6 }
   0x8   :  { %v98_v21 = vperm.slane %v90_v14, 1  ;;  %v413_v22 = vperm.slane %v91_v15, 1  ;;  %v54_v23 = vperm.slane %v46_v18, 0  ;;  %v55_v24 = vperm.slane %v47_v19, 0 }
   0x9   :  { %v100_v35 = vperm.slane %v92_v25, 1  ;;  %v101_v36 = vperm.slane %v93_v26, 1  ;;  %v56_v37 = vperm.slane %v48_v27, 0  ;;  %v57_v39 = vperm.slane %v49_v30, 0 }
   0xa   :  { %307 = vset.pattern.permute.xlu0 %v348_v4  ;;  %309 = vset.pattern.permute.xlu1 %v348_v4 }
   0xb   :  { %87 = vperm.xlu0 %307, %v24_v1   ;;  %83 = vperm.xlu1 %309, %v23_v2  }
   0xc   :  { %311 = vset.pattern.permute.xlu2 %v348_v4 }
   0xd   :  { %79 = vperm.xlu2 %311, %v22_v3  }
  0x13   :  { %312 = vset.pattern.permute.xlu1 %v347_v0  ;;  %75 = vperm.xlu0 %307, %v21_v5  }
  0x14   :  { %155 = vperm.xlu1 %312, %v137_v6  }
  0x15   :  { %313 = vset.pattern.permute.xlu2 %v347_v0 }
  0x16   :  { %27 = vperm.xlu2 %313, %v21_v5  }
  0x1b   :  { %314 = vset.pattern.permute.xlu0 %v347_v0 }
  0x1c   :  { %150 = vperm.xlu1 %312, %v136_v7   ;;  %140 = vperm.xlu0 %314, %v134_v8  }
  0x1e   :  { %145 = vperm.xlu2 %313, %v135_v9  }
  0x24   :  { %194 = vperm.xlu1 %312, %v191_v10  }
  0x5e   :  { %v33_v11 = vpop.permute.xlu2 %32 }
  0x5f   :  { %v62_v28 = vmul.f32 %v54_v23, %v33_v11  ;;  %v63_v31 = vmul.f32 %v55_v24, %v33_v11  ;;  %v64_v42 = vmul.f32 %v56_v37, %v33_v11  ;;  %v65_v46 = vmul.f32 %v57_v39, %v33_v11 }
  0x67   :  { %v80_v12 = vpop.permute.xlu2 %79 }
  0x68   :  { %v106_v29 = vmul.f32 %v98_v21, %v80_v12  ;;  %v107_v32 = vmul.f32 %v413_v22, %v80_v12  ;;  %v108_v47 = vmul.f32 %v100_v35, %v80_v12  ;;  %v109_v48 = vmul.f32 %v101_v36, %v80_v12 }
  0x6a   :  { %v122_v38 = vadd.f32 %v106_v29, %v62_v28  ;;  %v123_v41 = vadd.f32 %v107_v32, %v63_v31  ;;  %v124_v61 = vadd.f32 %v108_v47, %v64_v42  ;;  %v125_v62 = vadd.f32 %v109_v48, %v65_v46 }
  0x70   :  { %v411_v20 = vpop.permute.xlu2 %27 }
  0x71   :  { %v58_v60 = vmul.f32 %v54_v23, %v411_v20  ;;  %v59_v4 = vmul.f32 %v55_v24, %v411_v20  ;;  %v60_v5 = vmul.f32 %v56_v37, %v411_v20  ;;  %v61_v30 = vmul.f32 %v57_v39, %v411_v20 }
  0x74   :  { %v409_v16 = vpop.permute.xlu1 %37  ;;  %v43_v17 = vpop.permute.xlu0 %42 }
  0x75   :  { %v70_v51 = vmul.f32 %v54_v23, %v43_v17  ;;  %v71_v52 = vmul.f32 %v55_v24, %v43_v17  ;;  %v72_v53 = vmul.f32 %v56_v37, %v43_v17  ;;  %v73_v55 = vmul.f32 %v57_v39, %v43_v17 }
  0x76   :  { %v66_v10 = vmul.f32 %v54_v23, %v409_v16  ;;  %v67_v13 = vmul.f32 %v55_v24, %v409_v16  ;;  %v68_v14 = vmul.f32 %v56_v37, %v409_v16  ;;  %v69_v17 = vmul.f32 %v57_v39, %v409_v16 }
  0x78   :  { %v146_v40 = vpop.permute.xlu2 %145 }
  0x79   :  { %v162_v50 = vadd.f32 %v146_v40, %v122_v38  ;;  %v163_v54 = vadd.f32 %v146_v40, %v123_v41  ;;  %v164_v11 = vadd.f32 %v146_v40, %v124_v61  ;;  %v165_v18 = vadd.f32 %v146_v40, %v125_v62 }
  0x7b   :  { %315 = vtanh.f32 %v162_v50 }
  0x7c   :  { %317 = vtanh.f32 %v163_v54 }
  0x7d   :  { %v88_v33 = vpop.permute.xlu0 %87  ;;  %v84_v34 = vpop.permute.xlu1 %83 }
  0x7e   :  { %v114_v43 = vmul.f32 %v98_v21, %v88_v33  ;;  %v115_v44 = vmul.f32 %v413_v22, %v88_v33  ;;  %v116_v45 = vmul.f32 %v100_v35, %v88_v33  ;;  %v117_v49 = vmul.f32 %v101_v36, %v88_v33 }
  0x7f   :  { %v110_v7 = vmul.f32 %v98_v21, %v84_v34  ;;  %v111_v8 = vmul.f32 %v413_v22, %v84_v34  ;;  %v112_v9 = vmul.f32 %v100_v35, %v84_v34  ;;  %v113_v12 = vmul.f32 %v101_v36, %v84_v34 }
  0x80   :  { %v130_v57 = vadd.f32 %v114_v43, %v70_v51  ;;  %v131_v58 = vadd.f32 %v115_v44, %v71_v52  ;;  %v132_v59 = vadd.f32 %v116_v45, %v72_v53  ;;  %v133_v0 = vadd.f32 %v117_v49, %v73_v55  ;;  %v190_v53 = vld [vmem:[%s437_s3] sm:$0x3] }
  0x81   :  { %v316_v25 = vpop.eup %315  ;;  %v126_v27 = vadd.f32 %v110_v7, %v66_v10  ;;  %v127_v28 = vadd.f32 %v111_v8, %v67_v13  ;;  %v128_v23 = vadd.f32 %v112_v9, %v68_v14  ;;  %v129_v32 = vadd.f32 %v113_v12, %v69_v17 }
  0x82   :  { %v318_v29 = vpop.eup %317 }
  0x85   :  { %v76_v56 = vpop.permute.xlu0 %75 }
  0x86   :  { %v156_v63 = vpop.permute.xlu1 %155  ;;  %v102_v15 = vmul.f32 %v98_v21, %v76_v56  ;;  %v103_v19 = vmul.f32 %v413_v22, %v76_v56  ;;  %v104_v26 = vmul.f32 %v100_v35, %v76_v56  ;;  %v105_v24 = vmul.f32 %v101_v36, %v76_v56 }
  0x87   :  { %v170_v1 = vadd.f32 %v156_v63, %v130_v57  ;;  %v171_v2 = vadd.f32 %v156_v63, %v131_v58  ;;  %v172_v3 = vadd.f32 %v156_v63, %v132_v59  ;;  %v173_v6 = vadd.f32 %v156_v63, %v133_v0 }
  0x88   :  { %v118_v38 = vadd.f32 %v102_v15, %v58_v60  ;;  %v119_v35 = vadd.f32 %v103_v19, %v59_v4  ;;  %v120_v42 = vadd.f32 %v104_v26, %v60_v5  ;;  %v121_v36 = vadd.f32 %v105_v24, %v61_v30 }
  0x89   :  { %319 = vtanh.f32 %v170_v1 }
  0x8a   :  { %321 = vtanh.f32 %v171_v2 }
  0x8b   :  { %323 = vtanh.f32 %v172_v3 }
  0x8c   :  { %325 = vtanh.f32 %v173_v6 }
  0x8d   :  { %327 = vtanh.f32 %v164_v11 }
  0x8e   :  { %v151_v31 = vpop.permute.xlu1 %150  ;;  %v141_v21 = vpop.permute.xlu0 %140  ;;  %329 = vtanh.f32 %v165_v18 }
  0x8f   :  { %v320_v33 = vpop.eup %319  ;;  %v166_v34 = vadd.f32 %v151_v31, %v126_v27  ;;  %v167_v16 = vadd.f32 %v151_v31, %v127_v28  ;;  %v168_v37 = vadd.f32 %v151_v31, %v128_v23  ;;  %v169_v40 = vadd.f32 %v151_v31, %v129_v32 }
  0x90   :  { %v322_v22 = vpop.eup %321  ;;  %213 = vmatpush.msra.mxu0 %v320_v33  ;;  %v158_v43 = vadd.f32 %v141_v21, %v118_v38  ;;  %v159_v39 = vadd.f32 %v141_v21, %v119_v35  ;;  %v160_v44 = vadd.f32 %v141_v21, %v120_v42  ;;  %v161_v46 = vadd.f32 %v141_v21, %v121_v36 }
  0x91   :  { %v324_v41 = vpop.eup %323  ;;  %331 = vtanh.f32 %v166_v34  ;;  %233 = vmatpush.msra.mxu1 %v322_v22 }
  0x92   :  { %v326_v20 = vpop.eup %325  ;;  %333 = vtanh.f32 %v167_v16  ;;  %253 = vmatpush.msra.mxu2 %v324_v41 }
  0x93   :  { %335 = vtanh.f32 %v168_v37  ;;  %273 = vmatpush.msra.mxu3 %v326_v20  ;;  %v328_v45 = vpop.eup %327 }
  0x94   :  { %337 = vtanh.f32 %v169_v40  ;;  %v330_v47 = vpop.eup %329 }
  0x95   :  { %339 = vtanh.f32 %v158_v43 }
  0x96   :  { %341 = vtanh.f32 %v159_v39  ;;  %v195_v58 = vpop.permute.xlu1 %194 }
  0x97   :  { %v332_v48 = vpop.eup %331  ;;  %343 = vtanh.f32 %v160_v44 }
  0x98   :  { %v334_v49 = vpop.eup %333  ;;  %345 = vtanh.f32 %v161_v46  ;;  %214 = vmatpush.msra.mxu0 %v332_v48 }
  0x99   :  { %v336_v50 = vpop.eup %335  ;;  %234 = vmatpush.msra.mxu1 %v334_v49 }
  0x9a   :  { %v338_v51 = vpop.eup %337  ;;  %254 = vmatpush.msra.mxu2 %v336_v50  ;;  %215 = vmatpush.msra.mxu0 %v316_v25 }
  0x9b   :  { %v340_v52 = vpop.eup %339  ;;  %274 = vmatpush.msra.mxu3 %v338_v51  ;;  %235 = vmatpush.msra.mxu1 %v318_v29 }
  0x9c   :  { %v342_v54 = vpop.eup %341  ;;  %255 = vmatpush.msra.mxu2 %v328_v45  ;;  %216 = vmatpush.msra.mxu0 %v340_v52 }
  0x9d   :  { %v344_v55 = vpop.eup %343  ;;  %275 = vmatpush.msra.mxu3 %v330_v47  ;;  %236 = vmatpush.msra.mxu1 %v342_v54 }
  0x9e   :  { %v346_v56 = vpop.eup %345  ;;  %256 = vmatpush.msra.mxu2 %v344_v55  ;;  %300 = vmatmul.msk.f32.vlgmr.msra.gmra.mxu0 %vm197_vm0, %v190_v53 }
  0x9f   :  { %276 = vmatpush.msra.mxu3 %v346_v56  ;;  %301 = vmatmul.msk.f32.vlgmr.msra.gmra.mxu1 %vm197_vm0, %v190_v53 }
  0xa0   :  { %302 = vmatmul.msk.f32.vlgmr.msra.gmra.mxu2 %vm197_vm0, %v190_v53  ;;  %303 = vmatmul.msk.f32.vlgmr.msra.gmra.mxu3 %vm197_vm0, %v190_v53 }
 0x11b   :  { %v218_v60 = vpop.f32.mrf.mxu0 }
 0x11c   :  { %v238_v57 = vpop.f32.mrf.mxu1  ;;  %v219_v2 = vadd.f32 %v218_v60, %v195_v58 }
 0x11d   :  { %v239_v59 = vadd.f32 %v238_v57, %v195_v58 }
 0x11f   :  { %v285_v63 = vrot.slane %v239_v59, 6 }
 0x121   :  { %v289_v5 = vsel %vm288_vm1, %v219_v2, %v285_v63 }
 0x123   :  { %v258_v61 = vpop.f32.mrf.mxu2  ;;  %v278_v62 = vpop.f32.mrf.mxu3 }
 0x124   :  { %v259_v0 = vadd.f32 %v258_v61, %v195_v58  ;;  %v279_v1 = vadd.f32 %v278_v62, %v195_v58 }
 0x126   :  { %v286_v3 = vrot.slane %v259_v0, 4  ;;  %v287_v4 = vrot.slane %v279_v1, 2 }
 0x128   :  { %v291_v6 = vsel %vm290_vm2, %v286_v3, %v287_v4 }
 0x129   :  { %v293_v7 = vsel %vm292_vm3, %v289_v5, %v291_v6 }
 0x12a   :  { %295 = vst [vmem:[%s438_s5] sm:$0xff] %v293_v7 }

</bundles_post_ra>
